<compile_context>
chip_gen: v7x
topology: tpu7x:2x2x1
jax: 0.10.0
libtpu: 0.0.40
codegen_flags: <defaults>
</compile_context>

<pallas_src>
import functools

import jax
import jax.numpy as jnp
from jax.experimental import pallas as pl
from jax.experimental.pallas import tpu as pltpu


def _decoder_attn_lstm_kernel(enc_ref, sbias_ref, w_ih_ref, w_hq_ref, b_ref,
                              w_k_ref, v_ref, out_ref, att_ref,
                              h_scr, c_scr, enc_k_scr):
    """One grid step = one decoder time step for one batch tile.

    enc_ref   : [TB, T, D]    encoder outputs (resident across the time axis)
    sbias_ref : [TB, T]       precomputed score bias (0 = valid, -1e30 = masked)
    w_ih_ref  : [D, 4H]       LSTM input->gate weights, gate order [i|f|o|g]
    w_hq_ref  : [H, 4H + A]   fused [w_hh (i|f|o|g) | w_q]
    b_ref     : [1, 4H]       LSTM gate bias (i|f|o|g), b_ih + b_hh folded
    w_k_ref   : [D, A]        attention key projection
    v_ref     : [1, A]        attention scoring vector
    out_ref   : hidden output block, either (TB, H) [folded] or (1, TB, H)
    att_ref   : attention block, either (TB, T) [folded] or (1, TB, T)
    scratch   : h_scr [TB,H], c_scr [TB,H], enc_k_scr [TB,T,A]  (persist over t)
    """
    H = w_ih_ref.shape[1] // 4
    t = pl.program_id(1)

    @pl.when(t == 0)
    def _init():
        h_scr[...] = jnp.zeros_like(h_scr)
        c_scr[...] = jnp.zeros_like(c_scr)
        # Attention keys, computed once per batch tile: [TB, T, A] (MXU).
        enc_k_scr[...] = jnp.einsum(
            'btd,da->bta', enc_ref[...], w_k_ref[...],
            preferred_element_type=jnp.float32).astype(enc_k_scr.dtype)

    h = h_scr[...]
    c = c_scr[...]

    # Fused h-projection: one MXU matmul -> [gates_h | q].
    hq = jnp.dot(h.astype(w_hq_ref.dtype), w_hq_ref[...],
                 preferred_element_type=jnp.float32)            # [TB, 4H + A]
    gates_h = hq[:, :4 * H]
    q = hq[:, 4 * H:]                                           # [TB, A]

    # Additive attention.  The [TB,T,A] tanh is the dominant EUP tensor; it
    # runs in enc_k's dtype (bf16 on v6e/v7x when matmul_dtype=bfloat16).
    e = jnp.tanh(enc_k_scr[...] + q[:, None, :].astype(enc_k_scr.dtype))
    scores = jnp.sum(e.astype(jnp.float32) * v_ref[...][None, :, :], axis=-1)
    # Loop-invariant mask folded into a precomputed additive bias: no per-step
    # iota / compare / select; masked exp() underflows to exactly 0.
    scores = scores + sbias_ref[...]                            # [TB, T]
    m = jnp.max(scores, axis=-1, keepdims=True)                 # [TB, 1]
    p = jnp.exp(scores - m)                                     # [TB, T]
    denom = jnp.maximum(jnp.sum(p, axis=-1, keepdims=True), jnp.float32(1e-30))
    alpha = p * pl.reciprocal(denom, approx=False)              # exact softmax

    # Context: per batch row this is a (1 x T) @ (T x D) matvec; M=1 would
    # waste >99% of the MXU rows, so use a VPU broadcast-mul + sublane reduce
    # (overlaps with the EUP tanh; keeps the MXU free for hq / gates matmuls).
    ctx = jnp.sum(alpha[:, :, None] * enc_ref[...].astype(jnp.float32), axis=1)

    # LSTM cell with context-only input.  Gates ordered [i|f|o|g]: one wide
    # sigmoid over 3H lanes, one tanh over H lanes.
    gates = (jnp.dot(ctx.astype(w_ih_ref.dtype), w_ih_ref[...],
                     preferred_element_type=jnp.float32)
             + gates_h + b_ref[...])                            # [TB, 4H]
    sig = jax.nn.sigmoid(gates[:, :3 * H])
    g_g = jnp.tanh(gates[:, 3 * H:])
    i_g = sig[:, :H]
    f_g = sig[:, H:2 * H]
    o_g = sig[:, 2 * H:3 * H]
    c_new = f_g * c + i_g * g_g
    h_new = o_g * jnp.tanh(c_new)

    h_scr[...] = h_new
    c_scr[...] = c_new
    if len(out_ref.shape) == 3:          # time-major fallback: (1, TB, *)
        out_ref[0] = h_new.astype(out_ref.dtype)
        att_ref[0] = alpha.astype(att_ref.dtype)
    else:                                # lane-dense folded: (TB, *)
        out_ref[...] = h_new.astype(out_ref.dtype)
        att_ref[...] = alpha.astype(att_ref.dtype)


def _has_megacore():
    """True on parts with 2 TensorCores per device (v4 / v5p / v7x)."""
    try:
        kind = jax.devices()[0].device_kind.lower()
    except Exception:
        return False
    return any(tag in kind for tag in ("v4", "v5p", "v7"))


def _reorder_gates_ifgo_to_ifog(w):
    """Reorder last-dim gate blocks from PyTorch (i, f, g, o) to (i, f, o, g)."""
    i, f, g, o = jnp.split(w, 4, axis=-1)
    return jnp.concatenate([i, f, o, g], axis=-1)


@functools.partial(jax.jit,
                   static_argnames=('batch_tile', 'matmul_dtype', 'att_dtype'))
def decoder_lstm_attention_context_only(enc_out, seq_lens, params,
                                        batch_tile=None,
                                        matmul_dtype=jnp.float32,
                                        att_dtype=jnp.float32):
    """enc_out: [B, T, D] f32, seq_lens: [B] int.  Returns (out, lens, attn).

    matmul_dtype: dtype for enc / weights / enc_k / the big tanh.  Use
      jnp.bfloat16 on v6e / v7x; keep float32 on v5e (no bf16 VPU/EUP).
    att_dtype: dtype of the [B, T, T] attention output (bf16 halves its
      O(B*T^2) HBM writeback).
    """
    B, T, D = enc_out.shape
    H = params['w_hh'].shape[0]
    A = params['w_q'].shape[1]

    esz = jnp.dtype(matmul_dtype).itemsize
    att_esz = jnp.dtype(att_dtype).itemsize

    def vmem_est(tb):
        # Approximate per-core VMEM working set: double-buffered pipeline
        # blocks + resident scratch + weights.  Used to size TB / vmem limit.
        return (2 * tb * T * D * esz                        # enc blocks
                + tb * T * A * esz                          # enc_k scratch
                + 2 * tb * T * 4                            # score-bias blocks
                + 2 * tb * H * 4 + 2 * tb * T * att_esz     # output blocks
                + 2 * tb * H * 4                            # h, c scratch
                + 2 * ((D + H) * 4 * H + H * A + D * A + 8 * H) * esz)

    if batch_tile is None:
        budget = 40 * 2**20   # leaves headroom inside v7x's 64 MiB VMEM
        # >= 2 batch blocks on megacore parts so the "parallel" axis shards.
        TB = B // 2 if (_has_megacore() and B % 16 == 0) else B
        while TB % 16 == 0 and vmem_est(TB) > budget:
            TB //= 2          # shrink, keeping TB a multiple of 8
    else:
        TB = batch_tile
    assert B % TB == 0, "batch_tile must divide batch"
    assert TB % 8 == 0 or TB == B, "batch_tile must be a multiple of 8 (or B)"
    nb = B // TB

    # Gate order (i,f,g,o) -> (i,f,o,g); fuse the two h-projections [w_hh|w_q].
    w_ih = _reorder_gates_ifgo_to_ifog(params['w_ih']).astype(matmul_dtype)
    w_hh = _reorder_gates_ifgo_to_ifog(params['w_hh'])
    b = _reorder_gates_ifgo_to_ifog(params['b']).astype(jnp.float32)
    w_hq = jnp.concatenate([w_hh, params['w_q']], axis=1).astype(matmul_dtype)
    w_k = params['w_k'].astype(matmul_dtype)
    v = params['v'].astype(jnp.float32)
    enc = enc_out.astype(matmul_dtype)

    # Loop-invariant mask, hoisted out of the kernel as an additive score bias.
    pos = jnp.arange(T, dtype=jnp.int32)[None, :]
    score_bias = jnp.where(pos < seq_lens.astype(jnp.int32)[:, None],
                           0.0, -1e30).astype(jnp.float32)      # [B, T]

    # Lane-dense folded outputs ([B, T*H] / [B, T*T]; free row-major reshape
    # afterwards) avoid the O(B*T*H + B*T^2) HBM transposes entirely; they
    # require H and T to be multiples of 128.  Otherwise fall back to the
    # time-major layout + an XLA transpose.
    folded = (H % 128 == 0) and (T % 128 == 0)
    if folded:
        out_shapes = (jax.ShapeDtypeStruct((B, T * H), jnp.float32),
                      jax.ShapeDtypeStruct((B, T * T), att_dtype))
        out_specs = (pl.BlockSpec((TB, H), lambda bb, tt: (bb, tt)),
                     pl.BlockSpec((TB, T), lambda bb, tt: (bb, tt)))
    else:
        out_shapes = (jax.ShapeDtypeStruct((T, B, H), jnp.float32),
                      jax.ShapeDtypeStruct((T, B, T), att_dtype))
        out_specs = (pl.BlockSpec((1, TB, H), lambda bb, tt: (tt, bb, 0)),
                     pl.BlockSpec((1, TB, T), lambda bb, tt: (tt, bb, 0)))

    # Explicit scoped-VMEM budget (safe across v5e/v6e/v7x; auto tile targets
    # <= 40 MiB, so the 64 MiB cap never binds on the default path).
    vmem_limit = int(min(64 * 2**20, max(32 * 2**20, int(1.5 * vmem_est(TB)))))

    out_raw, att_raw = pl.pallas_call(
        _decoder_attn_lstm_kernel,
        out_shape=out_shapes,
        grid_spec=pltpu.PrefetchScalarGridSpec(
            num_scalar_prefetch=0,
            grid=(nb, T),
            in_specs=[
                pl.BlockSpec((TB, T, D),     lambda bb, tt: (bb, 0, 0)),  # enc
                pl.BlockSpec((TB, T),        lambda bb, tt: (bb, 0)),     # bias
                pl.BlockSpec((D, 4 * H),     lambda bb, tt: (0, 0)),      # w_ih
                pl.BlockSpec((H, 4 * H + A), lambda bb, tt: (0, 0)),      # w_hq
                pl.BlockSpec((1, 4 * H),     lambda bb, tt: (0, 0)),      # b
                pl.BlockSpec((D, A),         lambda bb, tt: (0, 0)),      # w_k
                pl.BlockSpec((1, A),         lambda bb, tt: (0, 0)),      # v
            ],
            out_specs=out_specs,
            scratch_shapes=[
                pltpu.VMEM((TB, H), jnp.float32),        # h
                pltpu.VMEM((TB, H), jnp.float32),        # c
                pltpu.VMEM((TB, T, A), matmul_dtype),    # enc_k
            ]),
        compiler_params=pltpu.CompilerParams(
            dimension_semantics=("parallel", "arbitrary"),
            vmem_limit_bytes=vmem_limit),
    )(enc, score_bias, w_ih, w_hq, b, w_k, v)

    if folded:
        output = out_raw.reshape(B, T, H)        # free row-major reshape
        attention = att_raw.reshape(B, T, T)
    else:
        output = jnp.transpose(out_raw, (1, 0, 2))
        attention = jnp.transpose(att_raw, (1, 0, 2))
    return output, seq_lens, attention


def _reference(enc_out, seq_lens, params):
    """Pure-JAX reference of the same forward pass (for verification)."""
    B, T, D = enc_out.shape
    H = params['w_hh'].shape[0]
    pos = jnp.arange(T)[None, :]
    valid = pos < seq_lens[:, None]
    enc_k = jnp.einsum('btd,da->bta', enc_out, params['w_k'])

    def step(carry, _t):
        h, c = carry
        q = h @ params['w_q']
        e = jnp.tanh(enc_k + q[:, None, :])
        scores = jnp.sum(e * params['v'][:, None, :], axis=-1)
        scores = jnp.where(valid, scores, -1e30)
        p = jnp.exp(scores - scores.max(-1, keepdims=True)) * valid
        alpha = p / p.sum(-1, keepdims=True)
        ctx = jnp.sum(alpha[:, :, None] * enc_out, axis=1)
        gates = ctx @ params['w_ih'] + h @ params['w_hh'] + params['b']
        i_g = jax.nn.sigmoid(gates[:, 0 * H:1 * H])
        f_g = jax.nn.sigmoid(gates[:, 1 * H:2 * H])
        g_g = jnp.tanh(gates[:, 2 * H:3 * H])
        o_g = jax.nn.sigmoid(gates[:, 3 * H:4 * H])
        c_new = f_g * c + i_g * g_g
        h_new = o_g * jnp.tanh(c_new)
        return (h_new, c_new), (h_new, alpha)

    (_, _), (outs, atts) = jax.lax.scan(
        step, (jnp.zeros((B, H)), jnp.zeros((B, H))), jnp.arange(T))
    return jnp.transpose(outs, (1, 0, 2)), jnp.transpose(atts, (1, 0, 2))


def init_params(key, input_dim, hidden_dim, attn_dim):
    """Deterministic init mimicking PyTorch LSTM default U(-1/sqrt(H), 1/sqrt(H))."""
    ks = jax.random.split(key, 6)
    k = 1.0 / jnp.sqrt(jnp.float32(hidden_dim))
    u = lambda kk, shape: jax.random.uniform(kk, shape, jnp.float32, -k, k)
    return {
        'w_ih': u(ks[0], (input_dim, 4 * hidden_dim)),
        'w_hh': u(ks[1], (hidden_dim, 4 * hidden_dim)),
        'b':    u(ks[2], (1, 4 * hidden_dim)),
        'w_q':  u(ks[3], (hidden_dim, attn_dim)),
        'w_k':  u(ks[4], (input_dim, attn_dim)),
        'v':    u(ks[5], (1, attn_dim)),
    }


def _run_check(B, T, D_in, H, A, lens, tol):
    key = jax.random.PRNGKey(0)
    k_enc, k_par = jax.random.split(key)
    enc_out = jax.random.normal(k_enc, (B, T, D_in), jnp.float32)
    seq_lens = jnp.asarray(lens, dtype=jnp.int32)
    params = init_params(k_par, D_in, H, A)

    output, lens_out, attn = decoder_lstm_attention_context_only(
        enc_out, seq_lens, params)
    jax.block_until_ready((output, lens_out, attn))

    ref_out, ref_attn = _reference(enc_out, seq_lens, params)
    assert output.shape == (B, T, H) and attn.shape == (B, T, T)
    assert jnp.allclose(output, ref_out, atol=tol, rtol=tol)
    assert jnp.allclose(attn, ref_attn, atol=tol, rtol=tol)
    # attention rows over valid positions sum to 1 (exact reciprocal in-kernel)
    assert jnp.allclose(attn.sum(-1), 1.0, atol=1e-3)


if __name__ == "__main__":
    # Full-precision f32 matmuls for both the kernel and the reference so the
    # cross-check is tight (production configs would pass matmul_dtype=bf16).
    jax.config.update("jax_default_matmul_precision", "highest")

    # 1) Module-scale shapes: time-major output path + wrapper transpose.
    _run_check(B=2, T=8, D_in=16, H=32, A=32, lens=[8, 6], tol=1e-2)

    # 2) Lane-dense shapes: folded [B, T*H] / [B, T*T] outputs (no transpose),
    #    batch tile < B on megacore parts so both TensorCores are used.
    _run_check(B=16, T=128, D_in=128, H=128, A=128,
               lens=[128, 100, 64, 128, 7, 96, 50, 1,
                     128, 33, 77, 128, 5, 60, 90, 12],
               tol=2e-2)

    print("KERNEL_OK")
</pallas_src>

<mosaic_0001>
module attributes {stable_mosaic.version = 11 : i64} {
  func.func @_decoder_attn_lstm_kernel(%arg0: i32, %arg1: i32, %arg2: memref<2x8x16xf32, #tpu.memory_space<vmem>>, %arg3: memref<2x8xf32, #tpu.memory_space<vmem>>, %arg4: memref<16x128xf32, #tpu.memory_space<vmem>>, %arg5: memref<32x160xf32, #tpu.memory_space<vmem>>, %arg6: memref<1x128xf32, #tpu.memory_space<vmem>>, %arg7: memref<16x32xf32, #tpu.memory_space<vmem>>, %arg8: memref<1x32xf32, #tpu.memory_space<vmem>>, %arg9: memref<1x2x32xf32, #tpu.memory_space<vmem>>, %arg10: memref<1x2x8xf32, #tpu.memory_space<vmem>>, %arg11: memref<2x32xf32, #tpu.memory_space<vmem>>, %arg12: memref<2x32xf32, #tpu.memory_space<vmem>>, %arg13: memref<2x8x32xf32, #tpu.memory_space<vmem>>) attributes {dimension_semantics = [#tpu.dimension_semantics<parallel>, #tpu.dimension_semantics<arbitrary>], iteration_bounds = array<i64: 1, 8>, scalar_prefetch = 0 : i64, scratch_operands = 3 : i64, tpu.core_type = #tpu.core_type<tc>, window_params = [{transform_indices = @transform_0, window_bounds = array<i64: 2, 8, 16>}, {transform_indices = @transform_1, window_bounds = array<i64: 2, 8>}, {pipeline_mode = #tpu.pipeline_mode<synchronous>, transform_indices = @transform_2, window_bounds = array<i64: 16, 128>}, {pipeline_mode = #tpu.pipeline_mode<synchronous>, transform_indices = @transform_3, window_bounds = array<i64: 32, 160>}, {pipeline_mode = #tpu.pipeline_mode<synchronous>, transform_indices = @transform_4, window_bounds = array<i64: 1, 128>}, {pipeline_mode = #tpu.pipeline_mode<synchronous>, transform_indices = @transform_5, window_bounds = array<i64: 16, 32>}, {pipeline_mode = #tpu.pipeline_mode<synchronous>, transform_indices = @transform_6, window_bounds = array<i64: 1, 32>}, {transform_indices = @transform_7, window_bounds = array<i64: 1, 2, 32>}, {transform_indices = @transform_8, window_bounds = array<i64: 1, 2, 8>}]} {
    %c0_i32 = arith.constant 0 : i32
    %0 = arith.cmpi eq, %arg1, %c0_i32 : i32
    %1 = arith.extui %0 : i1 to i32
    %c0_i32_0 = arith.constant 0 : i32
    %2 = arith.cmpi ne, %1, %c0_i32_0 : i32
    scf.if %2 {
      %cst_37 = arith.constant 0.000000e+00 : f32
      %68 = vector.broadcast %cst_37 : f32 to vector<2x32xf32>
      %c0_38 = arith.constant 0 : index
      %c0_39 = arith.constant 0 : index
      %69 = vector.load %arg11[%c0_38, %c0_39] : memref<2x32xf32, #tpu.memory_space<vmem>>, vector<2x32xf32>
      tpu.vector_store %arg11[%c0_38, %c0_39], %68 {strides = array<i32>} : memref<2x32xf32, #tpu.memory_space<vmem>>, vector<2x32xf32>,
      %cst_40 = arith.constant 0.000000e+00 : f32
      %70 = vector.broadcast %cst_40 : f32 to vector<2x32xf32>
      %c0_41 = arith.constant 0 : index
      %c0_42 = arith.constant 0 : index
      %71 = vector.load %arg12[%c0_41, %c0_42] : memref<2x32xf32, #tpu.memory_space<vmem>>, vector<2x32xf32>
      tpu.vector_store %arg12[%c0_41, %c0_42], %70 {strides = array<i32>} : memref<2x32xf32, #tpu.memory_space<vmem>>, vector<2x32xf32>,
      %c0_43 = arith.constant 0 : index
      %c0_44 = arith.constant 0 : index
      %c0_45 = arith.constant 0 : index
      %72 = vector.load %arg2[%c0_43, %c0_44, %c0_45] : memref<2x8x16xf32, #tpu.memory_space<vmem>>, vector<2x8x16xf32>
      %c0_46 = arith.constant 0 : index
      %c0_47 = arith.constant 0 : index
      %73 = vector.load %arg7[%c0_46, %c0_47] : memref<16x32xf32, #tpu.memory_space<vmem>>, vector<16x32xf32>
      "tpu.trace_start"() <{level = 10 : i32, message = "btd,da->bta"}> : () -> ()
      %cst_48 = arith.constant dense<0.000000e+00> : vector<2x8x32xf32>
      %74 = tpu.matmul %72, %73, %cst_48 {dimension_numbers = #tpu.dot_dimension_numbers<[2], [0], [0, 1], [1], [0, 0, 0, 1, 1, 1], [], []>, precision = #tpu.contract_precision<fp32>} : vector<2x8x16xf32>, vector<16x32xf32>, vector<2x8x32xf32> -> vector<2x8x32xf32>
      "tpu.trace_stop"() : () -> ()
      %c0_49 = arith.constant 0 : index
      %c0_50 = arith.constant 0 : index
      %c0_51 = arith.constant 0 : index
      %75 = vector.load %arg13[%c0_49, %c0_50, %c0_51] : memref<2x8x32xf32, #tpu.memory_space<vmem>>, vector<2x8x32xf32>
      tpu.vector_store %arg13[%c0_49, %c0_50, %c0_51], %74 {strides = array<i32>} : memref<2x8x32xf32, #tpu.memory_space<vmem>>, vector<2x8x32xf32>,
    } else {
    }
    %c0 = arith.constant 0 : index
    %c0_1 = arith.constant 0 : index
    %3 = vector.load %arg11[%c0, %c0_1] : memref<2x32xf32, #tpu.memory_space<vmem>>, vector<2x32xf32>
    %c0_2 = arith.constant 0 : index
    %c0_3 = arith.constant 0 : index
    %4 = vector.load %arg12[%c0_2, %c0_3] : memref<2x32xf32, #tpu.memory_space<vmem>>, vector<2x32xf32>
    %c0_4 = arith.constant 0 : index
    %c0_5 = arith.constant 0 : index
    %5 = vector.load %arg5[%c0_4, %c0_5] : memref<32x160xf32, #tpu.memory_space<vmem>>, vector<32x160xf32>
    %cst = arith.constant dense<0.000000e+00> : vector<2x160xf32>
    %6 = tpu.matmul %3, %5, %cst {dimension_numbers = #tpu.dot_dimension_numbers<[1], [0], [0], [1], [0, 0, 1, 1], [], []>, precision = #tpu.contract_precision<fp32>} : vector<2x32xf32>, vector<32x160xf32>, vector<2x160xf32> -> vector<2x160xf32>
    %7 = vector.extract_strided_slice %6 {offsets = [0, 0], sizes = [2, 128], strides = [1, 1]} : vector<2x160xf32> to vector<2x128xf32>
    %8 = vector.extract_strided_slice %6 {offsets = [0, 128], sizes = [2, 32], strides = [1, 1]} : vector<2x160xf32> to vector<2x32xf32>
    %c0_6 = arith.constant 0 : index
    %c0_7 = arith.constant 0 : index
    %c0_8 = arith.constant 0 : index
    %9 = vector.load %arg13[%c0_6, %c0_7, %c0_8] : memref<2x8x32xf32, #tpu.memory_space<vmem>>, vector<2x8x32xf32>
    %10 = vector.shape_cast %8 : vector<2x32xf32> to vector<2x1x32xf32>
    %11 = vector.broadcast %10 : vector<2x1x32xf32> to vector<2x8x32xf32>
    %12 = arith.addf %9, %11 : vector<2x8x32xf32>
    %13 = math.tanh %12 : vector<2x8x32xf32>
    %c0_9 = arith.constant 0 : index
    %c0_10 = arith.constant 0 : index
    %14 = vector.load %arg8[%c0_9, %c0_10] : memref<1x32xf32, #tpu.memory_space<vmem>>, vector<1x32xf32>
    %15 = vector.shape_cast %14 : vector<1x32xf32> to vector<1x1x32xf32>
    %16 = vector.broadcast %15 : vector<1x1x32xf32> to vector<2x8x32xf32>
    %17 = arith.mulf %13, %16 : vector<2x8x32xf32>
    %cst_11 = arith.constant dense<0.000000e+00> : vector<2x8xf32>
    %18 = vector.multi_reduction <add>, %17, %cst_11 [2] : vector<2x8x32xf32> to vector<2x8xf32>
    %c0_12 = arith.constant 0 : index
    %c0_13 = arith.constant 0 : index
    %19 = vector.load %arg3[%c0_12, %c0_13] : memref<2x8xf32, #tpu.memory_space<vmem>>, vector<2x8xf32>
    %20 = arith.addf %18, %19 : vector<2x8xf32>
    %cst_14 = arith.constant dense<0xFF800000> : vector<2xf32>
    %21 = vector.multi_reduction <maximumf>, %20, %cst_14 [1] : vector<2x8xf32> to vector<2xf32>
    %22 = vector.shape_cast %21 : vector<2xf32> to vector<2x1xf32>
    %23 = vector.broadcast %22 : vector<2x1xf32> to vector<2x8xf32>
    %24 = arith.subf %20, %23 : vector<2x8xf32>
    %25 = math.exp %24 : vector<2x8xf32>
    %cst_15 = arith.constant dense<0.000000e+00> : vector<2xf32>
    %26 = vector.multi_reduction <add>, %25, %cst_15 [1] : vector<2x8xf32> to vector<2xf32>
    %27 = vector.shape_cast %26 : vector<2xf32> to vector<2x1xf32>
    %cst_16 = arith.constant 1.000000e-30 : f32
    %28 = vector.broadcast %cst_16 : f32 to vector<2x1xf32>
    %29 = arith.maximumf %27, %28 : vector<2x1xf32>
    %30 = tpu.reciprocal %29 : vector<2x1xf32> -> vector<2x1xf32>
    %31 = vector.broadcast %30 : vector<2x1xf32> to vector<2x8xf32>
    %32 = arith.mulf %25, %31 : vector<2x8xf32>
    %33 = vector.shape_cast %32 : vector<2x8xf32> to vector<2x8x1xf32>
    %c0_17 = arith.constant 0 : index
    %c0_18 = arith.constant 0 : index
    %c0_19 = arith.constant 0 : index
    %34 = vector.load %arg2[%c0_17, %c0_18, %c0_19] : memref<2x8x16xf32, #tpu.memory_space<vmem>>, vector<2x8x16xf32>
    %35 = vector.broadcast %33 : vector<2x8x1xf32> to vector<2x8x16xf32>
    %36 = arith.mulf %35, %34 : vector<2x8x16xf32>
    %cst_20 = arith.constant dense<0.000000e+00> : vector<2x16xf32>
    %37 = vector.multi_reduction <add>, %36, %cst_20 [1] : vector<2x8x16xf32> to vector<2x16xf32>
    %c0_21 = arith.constant 0 : index
    %c0_22 = arith.constant 0 : index
    %38 = vector.load %arg4[%c0_21, %c0_22] : memref<16x128xf32, #tpu.memory_space<vmem>>, vector<16x128xf32>
    %cst_23 = arith.constant dense<0.000000e+00> : vector<2x128xf32>
    %39 = tpu.matmul %37, %38, %cst_23 {dimension_numbers = #tpu.dot_dimension_numbers<[1], [0], [0], [1], [0, 0, 1, 1], [], []>, precision = #tpu.contract_precision<fp32>} : vector<2x16xf32>, vector<16x128xf32>, vector<2x128xf32> -> vector<2x128xf32>
    %40 = arith.addf %39, %7 : vector<2x128xf32>
    %c0_24 = arith.constant 0 : index
    %c0_25 = arith.constant 0 : index
    %41 = vector.load %arg6[%c0_24, %c0_25] : memref<1x128xf32, #tpu.memory_space<vmem>>, vector<1x128xf32>
    %42 = vector.broadcast %41 : vector<1x128xf32> to vector<2x128xf32>
    %43 = arith.addf %40, %42 : vector<2x128xf32>
    %44 = vector.extract_strided_slice %43 {offsets = [0, 0], sizes = [2, 96], strides = [1, 1]} : vector<2x128xf32> to vector<2x96xf32>
    %45 = arith.negf %44 : vector<2x96xf32>
    %46 = math.exp %45 : vector<2x96xf32>
    %cst_26 = arith.constant 1.000000e+00 : f32
    %47 = vector.broadcast %cst_26 : f32 to vector<2x96xf32>
    %48 = arith.addf %47, %46 : vector<2x96xf32>
    %49 = arith.divf %47, %48 : vector<2x96xf32>
    %50 = vector.extract_strided_slice %43 {offsets = [0, 96], sizes = [2, 32], strides = [1, 1]} : vector<2x128xf32> to vector<2x32xf32>
    %51 = math.tanh %50 : vector<2x32xf32>
    %52 = vector.extract_strided_slice %49 {offsets = [0, 0], sizes = [2, 32], strides = [1, 1]} : vector<2x96xf32> to vector<2x32xf32>
    %53 = vector.extract_strided_slice %49 {offsets = [0, 32], sizes = [2, 32], strides = [1, 1]} : vector<2x96xf32> to vector<2x32xf32>
    %54 = vector.extract_strided_slice %49 {offsets = [0, 64], sizes = [2, 32], strides = [1, 1]} : vector<2x96xf32> to vector<2x32xf32>
    %55 = arith.mulf %53, %4 : vector<2x32xf32>
    %56 = arith.mulf %52, %51 : vector<2x32xf32>
    %57 = arith.addf %55, %56 : vector<2x32xf32>
    %58 = math.tanh %57 : vector<2x32xf32>
    %59 = arith.mulf %54, %58 : vector<2x32xf32>
    %c0_27 = arith.constant 0 : index
    %c0_28 = arith.constant 0 : index
    %60 = vector.load %arg11[%c0_27, %c0_28] : memref<2x32xf32, #tpu.memory_space<vmem>>, vector<2x32xf32>
    tpu.vector_store %arg11[%c0_27, %c0_28], %59 {strides = array<i32>} : memref<2x32xf32, #tpu.memory_space<vmem>>, vector<2x32xf32>,
    %c0_29 = arith.constant 0 : index
    %c0_30 = arith.constant 0 : index
    %61 = vector.load %arg12[%c0_29, %c0_30] : memref<2x32xf32, #tpu.memory_space<vmem>>, vector<2x32xf32>
    tpu.vector_store %arg12[%c0_29, %c0_30], %57 {strides = array<i32>} : memref<2x32xf32, #tpu.memory_space<vmem>>, vector<2x32xf32>,
    %c0_31 = arith.constant 0 : index
    %c0_32 = arith.constant 0 : index
    %c0_33 = arith.constant 0 : index
    %62 = vector.load %arg9[%c0_31, %c0_32, %c0_33] : memref<1x2x32xf32, #tpu.memory_space<vmem>>, vector<1x2x32xf32>
    %63 = vector.shape_cast %62 : vector<1x2x32xf32> to vector<2x32xf32>
    %64 = vector.shape_cast %59 : vector<2x32xf32> to vector<1x2x32xf32>
    tpu.vector_store %arg9[%c0_31, %c0_32, %c0_33], %64 {strides = array<i32>} : memref<1x2x32xf32, #tpu.memory_space<vmem>>, vector<1x2x32xf32>,
    %c0_34 = arith.constant 0 : index
    %c0_35 = arith.constant 0 : index
    %c0_36 = arith.constant 0 : index
    %65 = vector.load %arg10[%c0_34, %c0_35, %c0_36] : memref<1x2x8xf32, #tpu.memory_space<vmem>>, vector<1x2x8xf32>
    %66 = vector.shape_cast %65 : vector<1x2x8xf32> to vector<2x8xf32>
    %67 = vector.shape_cast %32 : vector<2x8xf32> to vector<1x2x8xf32>
    tpu.vector_store %arg10[%c0_34, %c0_35, %c0_36], %67 {strides = array<i32>} : memref<1x2x8xf32, #tpu.memory_space<vmem>>, vector<1x2x8xf32>,
    return
  }
  func.func @transform_0(%arg0: i32, %arg1: i32) -> (i32, i32, i32) {
    %c0_i32 = arith.constant 0 : i32
    %c0_i32_0 = arith.constant 0 : i32
    %c0_i32_1 = arith.constant 0 : i32
    return %arg0, %c0_i32, %c0_i32_0 : i32, i32, i32
  }
  func.func @transform_1(%arg0: i32, %arg1: i32) -> (i32, i32) {
    %c0_i32 = arith.constant 0 : i32
    %c0_i32_0 = arith.constant 0 : i32
    return %arg0, %c0_i32 : i32, i32
  }
  func.func @transform_2(%arg0: i32, %arg1: i32) -> (i32, i32) {
    %c0_i32 = arith.constant 0 : i32
    %c0_i32_0 = arith.constant 0 : i32
    %c0_i32_1 = arith.constant 0 : i32
    return %c0_i32, %c0_i32_0 : i32, i32
  }
  func.func @transform_3(%arg0: i32, %arg1: i32) -> (i32, i32) {
    %c0_i32 = arith.constant 0 : i32
    %c0_i32_0 = arith.constant 0 : i32
    %c0_i32_1 = arith.constant 0 : i32
    return %c0_i32, %c0_i32_0 : i32, i32
  }
  func.func @transform_4(%arg0: i32, %arg1: i32) -> (i32, i32) {
    %c0_i32 = arith.constant 0 : i32
    %c0_i32_0 = arith.constant 0 : i32
    %c0_i32_1 = arith.constant 0 : i32
    return %c0_i32, %c0_i32_0 : i32, i32
  }
  func.func @transform_5(%arg0: i32, %arg1: i32) -> (i32, i32) {
    %c0_i32 = arith.constant 0 : i32
    %c0_i32_0 = arith.constant 0 : i32
    %c0_i32_1 = arith.constant 0 : i32
    return %c0_i32, %c0_i32_0 : i32, i32
  }
  func.func @transform_6(%arg0: i32, %arg1: i32) -> (i32, i32) {
    %c0_i32 = arith.constant 0 : i32
    %c0_i32_0 = arith.constant 0 : i32
    %c0_i32_1 = arith.constant 0 : i32
    return %c0_i32, %c0_i32_0 : i32, i32
  }
  func.func @transform_7(%arg0: i32, %arg1: i32) -> (i32, i32, i32) {
    %c0_i32 = arith.constant 0 : i32
    %c0_i32_0 = arith.constant 0 : i32
    return %arg1, %arg0, %c0_i32 : i32, i32, i32
  }
  func.func @transform_8(%arg0: i32, %arg1: i32) -> (i32, i32, i32) {
    %c0_i32 = arith.constant 0 : i32
    %c0_i32_0 = arith.constant 0 : i32
    return %arg1, %arg0, %c0_i32 : i32, i32, i32
  }
}

</mosaic_0001>

<bundles_post_ra>
// kernel: decoder_lstm_attention_context_only.1
= control target key start
LH: loop header
LB: loop body
LE: loop exit
PB: predicated region body
PF: predicated region fallthrough
CT: control target
= control target key end

     0   :  { %s2660_s27 = smov 0   ;;  %s2662_s28 = smov 0   ;;  %s2888_s0 = inlined_call_operand.vmem [shape: f32[2,8,16], index: 0, kind: input, shape index: {}]   ;;  %s2889_s1 = inlined_call_operand.vmem [shape: f32[2,8], index: 1, kind: input, shape index: {}]   ;;  %s2890_s2 = inlined_call_operand.vmem [shape: f32[16,128], index: 2, kind: input, shape index: {}]   ;;  %s2891_s3 = inlined_call_operand.vmem [shape: f32[32,160], index: 3, kind: input, shape index: {}]   ;;  %s2892_s4 = inlined_call_operand.vmem [shape: f32[1,128], index: 4, kind: input, shape index: {}]   ;;  %s2893_s5 = inlined_call_operand.vmem [shape: f32[16,32], index: 5, kind: input, shape index: {}]   ;;  %s2894_s6 = inlined_call_operand.vmem [shape: f32[1,32], index: 6, kind: input, shape index: {}]   ;;  %s2895_s7 = inlined_call_operand.vmem [shape: f32[8,2,32], index: 7, kind: output, shape index: {0}]   ;;  %s2896_s8 = inlined_call_operand.vmem [shape: f32[8,2,8], index: 8, kind: output, shape index: {1}]  }
   0x1   :  { %s2664_s29 = smov 0  }
   0x2 LB: > { %s28_s30 = sadd.s32 1, %s2600_s28  ;;  %p2284_p0 = scmp.ge.s32.totalorder %s2604_s29, 1  ;;  %s2604_s29 = sphi %s2664_s29, %s19_s29   ;;  %s2600_s28 = sphi %s2662_s28, %s2898_s28   ;;  %s2596_s27 = sphi %s2660_s27, %s2897_s27  }
   0x3   : > { %p29_p1 = scmp.ge.s32.totalorder %s28_s30, 8  ;;  %p291_p2 = scmp.lt.s32.totalorder %s2604_s29, 9 }
   0x5   : > { %s2900_s30 = smov (%p29_p1, %s28_s30), 0  ;;  %p292_p3 = pnand %p2284_p0, %p291_p2 }
   0x6   : > { %p348_p4 = scmp.lt.s32.totalorder (!%p292_p3), %s2596_s27, 7  ;;  %p2287_p5 = scmp.ne.s32.totalorder (!%p292_p3), %s2596_s27, 0 }
   0x7   : > { %295 = sbr.rel (%p292_p3) target bundleno = 2166 (0x876), region = 48 }
   0xe   : > { %s349_s9 = scalar_select %p348_p4, %s2596_s27, 7 }
   0xf   : > { %365 = sbr.rel (%p2287_p5) target bundleno = 261 (0x105), region = 52  ;;  %v371_v0 = vld [vmem:[%s2893_s5] sm:$0xff] (!%p2287_p5)  ;;  %v372_v1 = vld [vmem:[%s2893_s5 + $0x8] sm:$0xff] (!%p2287_p5)  ;;  %vm373_vm0 = vcmask (!%p2287_p5), 130048   ;;  %vm366_vm1 = vcmask (!%p2287_p5), 254976   ;;  %v2606_v7 = vmov (!%p2287_p5), 0.0  }
  0x10   : > { %s2285_s10 = sshll.u32 %s349_s9, 1  ;;  %v369_v2 = vld [vmem:[%s2888_s0] sm:$0xff] (!%p2287_p5)  ;;  %v381_v3 = vand.u32 (!%p2287_p5), 4294901760, %v371_v0  ;;  %v384_v4 = vand.u32 (!%p2287_p5), 4294901760, %v372_v1  ;;  %v370_v5 = vld [vmem:[%s2888_s0 + $0x8] sm:$0xff] (!%p2287_p5)  ;;  %vm882_vm2 = vcmask (!%p2287_p5), 261120  }
  0x11   : > { %s2681_s13 = scalar_lea.vmem %s2895_s7, %s2285_s10  ;;  %s2686_s16 = scalar_lea.vmem %s2896_s8, %s2285_s10  ;;  %v375_v6 = vsel (!%p2287_p5), %vm373_vm0, %v369_v2, 0  ;;  %367 = vst.msk [vmem:[#allocation2] sm:$0x3] (!%p2287_p5), %vm366_vm1, %v2606_v7  ;;  %368 = vst.msk [vmem:[#allocation3] sm:$0x3] (!%p2287_p5), %vm366_vm1, %v2606_v7  ;;  %v378_v8 = vsel (!%p2287_p5), %vm373_vm0, %v370_v5, 0 }
  0x12   : > { %v447_v9 = vand.u32 (!%p2287_p5), 4294901760, %v375_v6  ;;  %v2419_v10 = vpack.c.bf16 (!%p2287_p5), %v384_v4, %v381_v3  ;;  %v457_v11 = vand.u32 (!%p2287_p5), 4294901760, %v378_v8  ;;  %v469_v12 = vsub.f32 (!%p2287_p5), %v371_v0, %v381_v3 }
  0x13   : > { %v476_v13 = vsub.f32 (!%p2287_p5), %v372_v1, %v384_v4 }
  0x14   : > { %v448_v14 = vsub.f32 (!%p2287_p5), %v375_v6, %v447_v9  ;;  %2432 = vmatprep.subr.bf16.mxu0 (!%p2287_p5), %v2419_v10  ;;  %2420 = vmatprep.subr.bf16.mxu1 (!%p2287_p5), %v2419_v10  ;;  %v458_v15 = vsub.f32 (!%p2287_p5), %v378_v8, %v457_v11  ;;  %v470_v16 = vand.u32 (!%p2287_p5), 4294901760, %v469_v12 }
  0x15   : > { %v477_v17 = vand.u32 (!%p2287_p5), 4294901760, %v476_v13  ;;  %2434 = vmatpush3.bf16.msra.mxu0 (!%p2287_p5), %v2419_v10  ;;  %2422 = vmatpush3.bf16.msra.mxu1 (!%p2287_p5), %v2419_v10  ;;  %v2427_v30 = vpack.c.bf16 (!%p2287_p5), %v476_v13, %v469_v12 }
  0x16   : > { %v449_v18 = vand.u32 4294901760, %v448_v14  ;;  %v459_v19 = vand.u32 4294901760, %v458_v15  ;;  %v471_v20 = vsub.f32 %v469_v12, %v470_v16 }
  0x17   : > { %v478_v21 = vsub.f32 %v476_v13, %v477_v17  ;;  %v2435_v22 = vpack.c.bf16 %v477_v17, %v470_v16 }
  0x18   : > { %2360 = vmatprep.mubr.f32.mxu0 %v449_v18  ;;  %v450_v23 = vsub.f32 %v448_v14, %v449_v18  ;;  %v460_v24 = vsub.f32 %v458_v15, %v459_v19  ;;  %v472_v25 = vand.u32 4294901760, %v471_v20 }
  0x19   : > { %2361 = vmatmul.mubr.f32.vlgmr.msra.gmra.mrb[0].mxu0 %v459_v19  ;;  %v479_v26 = vand.u32 4294901760, %v478_v21  ;;  %2436 = vmatprep.subr.bf16.mxu0 %v2435_v22 }
  0x1a   : > { %v451_v27 = vand.u32 4294901760, %v450_v23  ;;  %2438 = vmatpush3.bf16.msra.mxu0 %v2435_v22  ;;  %2367 = vmatprep.mubr.f32.mxu0 %v447_v9  ;;  %v461_v28 = vand.u32 4294901760, %v460_v24 }
  0x1b   : > { %v2423_v29 = vpack.c.bf16 %v479_v26, %v472_v25  ;;  %2440 = vmatprep.subr.bf16.mxu0 %v2419_v10 }
  0x1c   : > { %2339 = vmatprep.mubr.f32.mxu1 %v451_v27 }
  0x1d   : > { %2340 = vmatmul.mubr.f32.vlgmr.msra.gmra.mrb[0].mxu1 %v461_v28  ;;  %2424 = vmatprep.subr.bf16.mxu1 %v2423_v29 }
  0x1e   : > { %2426 = vmatpush3.bf16.msra.mxu1 %v2423_v29  ;;  %2346 = vmatprep.mubr.f32.mxu1 %v447_v9 }
  0x1f   : > { %2428 = vmatprep.subr.bf16.mxu1 %v2427_v30 }
  0x21   : > { %2368 = vmatmul.mubr.f32.vlgmr.msra.gmra.mrb[0].mxu0 %v457_v11 }
  0x22   : > { %2442 = vmatpush3.bf16.msra.mxu0 %v2419_v10  ;;  %2374 = vmatprep.mubr.f32.mxu0 %v447_v9 }
  0x25   : > { %2347 = vmatmul.mubr.f32.vlgmr.msra.gmra.mrb[0].mxu1 %v457_v11 }
  0x26   : > { %2430 = vmatpush3.bf16.msra.mxu1 %v2427_v30  ;;  %2353 = vmatprep.mubr.f32.mxu1 %v448_v14 }
  0x29   : > { %2375 = vmatmul.mubr.f32.vlgmr.msra.gmra.mrb[0].mxu0 %v457_v11 }
  0x2d   : > { %2354 = vmatmul.mubr.f32.vlgmr.msra.gmra.mrb[0].mxu1 %v458_v15 }
  0xfc   : > { %v2376_v31 = vpop.f32.mrb[0].mxu0 }
  0xfd   : > { %v872_v32 = vpop.f32.mrb[1].mxu0 }
 0x100   : > { %v2355_v33 = vpop.f32.mrb[0].mxu1 }
 0x101   : > { %v2509_v34 = vadd.f32 %v2376_v31, %v2355_v33  ;;  %v626_v35 = vpop.f32.mrb[1].mxu1 }
 0x102   : > { %v2510_v36 = vadd.f32 %v872_v32, %v626_v35 }
 0x103   : > { %884 = vst.msk [vmem:[#allocation4 + $0x8] sm:$0xff] %vm882_vm2, %v2509_v34 }
 0x104   : > { %883 = vst.msk [vmem:[#allocation4] sm:$0xff] %vm882_vm2, %v2510_v36 }
 0x105 PF: > { %v2703_v37 = vld [vmem:[%s2891_s3 + $0x8] sm:$0xff]  ;;  %v890_v38 = vld [vmem:[%s2891_s3 + $0x18] sm:$0xff]  ;;  %v2711_v39 = vld [vmem:[%s2891_s3] sm:$0xff]  ;;  %v2607_v46 = vmov 0.0   ;;  %vm895_vm3 = vcmask 261120   ;;  %vm1534_vm4 = vcmask 1041409  }
 0x106   : > { %v899_v40 = vand.u32 4294901760, %v2703_v37  ;;  %v903_v41 = vand.u32 4294901760, %v890_v38  ;;  %v889_v42 = vld [vmem:[%s2891_s3 + $0x10] sm:$0xff]  ;;  %v901_v43 = vand.u32 4294901760, %v2711_v39  ;;  %v892_v44 = vld [vmem:[%s2891_s3 + $0x28] sm:$0xff]  ;;  %v894_v45 = vld [vmem:[%s2891_s3 + $0x38] sm:$0xff]  ;;  %1087 = vmatprep.mubr.f32.mxu0 %v2607_v46  ;;  %971 = vmatprep.mubr.f32.mxu1 %v2607_v46 }
 0x107   : > { %v905_v47 = vand.u32 4294901760, %v889_v42  ;;  %v907_v48 = vand.u32 4294901760, %v892_v44  ;;  %v911_v49 = vand.u32 4294901760, %v894_v45  ;;  %v891_v50 = vld [vmem:[%s2891_s3 + $0x20] sm:$0xff]  ;;  %v893_v51 = vld [vmem:[%s2891_s3 + $0x30] sm:$0xff]  ;;  %vm1537_vm5 = vcmask 58368  }
 0x108   : > { %v2733_v52 = vsub.f32 %v2703_v37, %v899_v40  ;;  %v2735_v53 = vsub.f32 %v890_v38, %v903_v41  ;;  %v2738_v54 = vsub.f32 %v2711_v39, %v901_v43  ;;  %v909_v55 = vand.u32 4294901760, %v891_v50  ;;  %v885_v12 = vld [vmem:[#allocation2] sm:$0x3]  ;;  %s2612_s20 = smov 32   ;;  %s2613_s21 = smov 96  }
 0x109   : > { %v2740_v56 = vsub.f32 %v889_v42, %v905_v47  ;;  %v2742_v57 = vsub.f32 %v892_v44, %v907_v48  ;;  %v2744_v58 = vsub.f32 %v894_v45, %v911_v49  ;;  %v913_v59 = vand.u32 4294901760, %v893_v51  ;;  %s2614_s22 = smov 64  }
 0x10a   : > { %v985_v60 = vand.u32 4294901760, %v2733_v52  ;;  %v997_v61 = vand.u32 4294901760, %v2735_v53  ;;  %v991_v62 = vand.u32 4294901760, %v2738_v54  ;;  %v2749_v63 = vsub.f32 %v891_v50, %v909_v55 }
 0x10b   : > { %v1003_v0 = vand.u32 4294901760, %v2740_v56  ;;  %v1009_v1 = vand.u32 4294901760, %v2742_v57  ;;  %v1021_v2 = vand.u32 4294901760, %v2744_v58  ;;  %v2754_v3 = vsub.f32 %v893_v51, %v913_v59 }
 0x10c   : > { %v986_v4 = vsub.f32 %v2733_v52, %v985_v60  ;;  %v998_v5 = vsub.f32 %v2735_v53, %v997_v61  ;;  %v992_v6 = vsub.f32 %v2738_v54, %v991_v62  ;;  %v1015_v7 = vand.u32 4294901760, %v2749_v63 }
 0x10d   : > { %v1004_v8 = vsub.f32 %v2740_v56, %v1003_v0  ;;  %v1010_v9 = vsub.f32 %v2742_v57, %v1009_v1  ;;  %v1022_v10 = vsub.f32 %v2744_v58, %v1021_v2  ;;  %v1027_v11 = vand.u32 4294901760, %v2754_v3 }
 0x10e   : > { %v987_v13 = vand.u32 4294901760, %v986_v4  ;;  %v999_v14 = vand.u32 4294901760, %v998_v5  ;;  %v993_v15 = vand.u32 4294901760, %v992_v6  ;;  %v1016_v16 = vsub.f32 %v2749_v63, %v1015_v7  ;;  %v1443_v5 = vld [vmem:[#allocation4 + $0x8] sm:$0xff] }
 0x10f   : > { %v1005_v17 = vand.u32 4294901760, %v1004_v8  ;;  %v1011_v18 = vand.u32 4294901760, %v1010_v9  ;;  %v1023_v19 = vand.u32 4294901760, %v1022_v10  ;;  %v1028_v20 = vsub.f32 %v2754_v3, %v1027_v11  ;;  %v2288_v9 = vld [vmem:[%s2894_s6] ss:$0 sm:$0xff] }
 0x110   : > { %v2451_v21 = vpack.c.bf16 %v999_v14, %v987_v13  ;;  %v1017_v22 = vand.u32 4294901760, %v1016_v16  ;;  %v897_v23 = vsel %vm895_vm3, %v885_v12, 0  ;;  %v2443_v30 = vpack.c.bf16 %v903_v41, %v899_v40 }
 0x111   : > { %v2453_v24 = vpack.c.bf16 %v1005_v17, %v993_v15  ;;  %v2455_v25 = vpack.c.bf16 %v1023_v19, %v1011_v18  ;;  %v1029_v26 = vand.u32 4294901760, %v1028_v20  ;;  %v972_v27 = vand.u32 4294901760, %v897_v23 }
 0x112   : > { %2452 = vmatprep.subr.bf16.mxu0 %v2451_v21  ;;  %v2459_v31 = vpack.c.bf16 %v2735_v53, %v2733_v52  ;;  %v2445_v32 = vpack.c.bf16 %v905_v47, %v901_v43  ;;  %v2447_v33 = vpack.c.bf16 %v911_v49, %v907_v48  ;;  %2444 = vmatprep.subr.bf16.mxu1 %v2443_v30  ;;  %v1448_v45 = vlaneseq  ;;  %v1496_v49 = vld [vmem:[%s2889_s1] sm:$0x3] }
 0x113   : > { %2454 = vmatpush1.bf16.msra.mxu0 %v2453_v24  ;;  %v2457_v28 = vpack.c.bf16 %v1029_v26, %v1017_v22  ;;  %v973_v29 = vsub.f32 %v897_v23, %v972_v27  ;;  %v2461_v35 = vpack.c.bf16 %v2740_v56, %v2738_v54  ;;  %v2463_v37 = vpack.c.bf16 %v2744_v58, %v2742_v57 }
 0x114   : > { %2456 = vmatprep.subr.bf16.mxu0 %v2455_v25  ;;  %2446 = vmatpush1.bf16.msra.mxu1 %v2445_v32  ;;  %v2449_v38 = vpack.c.bf16 %v913_v59, %v909_v55  ;;  %v2465_v40 = vpack.c.bf16 %v2754_v3, %v2749_v63  ;;  %v2475_v41 = vpack.c.bf16 %v997_v61, %v985_v60  ;;  %v1449_v47 = vshrl.u32 %v1448_v45, 7 }
 0x115   : > { %v974_v34 = vand.u32 4294901760, %v973_v29  ;;  %2448 = vmatprep.subr.bf16.mxu1 %v2447_v33  ;;  %v2477_v42 = vpack.c.bf16 %v1003_v0, %v991_v62  ;;  %v2479_v43 = vpack.c.bf16 %v1021_v2, %v1009_v1  ;;  %v2481_v44 = vpack.c.bf16 %v1027_v11, %v1015_v7  ;;  %v1442_v2 = vld [vmem:[#allocation4] sm:$0xff] }
 0x116   : > { %v2803_v48 = vsub.s32 0, %v1449_v47  ;;  %v2808_v50 = vsub.s32 1, %v1449_v47  ;;  %v2608_v55 = vmov 1966171168   ;;  %v2609_v16 = vmov 0  }
 0x117   : > { %2458 = vmatpush1.bf16.msra.mxu0 %v2457_v28  ;;  %v975_v36 = vsub.f32 %v973_v29, %v974_v34  ;;  %v1446_v56 = vunpack.c.l.s4 %v2608_v55  ;;  %2562 = vset.pattern.permute.xlu0 %v2609_v16  ;;  %v1525_v23 = vand.u32 127, %v1448_v45  ;;  %vm2611_vm6 = vmmov 0  }
 0x118   : > { %2460 = vmatprep.subr.bf16.mxu0 %v2459_v31  ;;  %2450 = vmatpush1.bf16.msra.mxu1 %v2449_v38  ;;  %v1501_v51 = vrot.slane %v1496_v49, %v2803_v48  ;;  %v1508_v52 = vrot.slane %v1496_v49, %v2808_v50  ;;  %vm1608_vm7 = vcmask 130048   ;;  %vm2129_vm8 = vcmask 254976  }
 0x119   : > { %v976_v39 = vand.u32 4294901760, %v975_v36  ;;  %v1447_v57 = vunpack.c.0.s8 %v1446_v56  ;;  %2563 = vset.pattern.permute.xlu1 %v2609_v16  ;;  %v2821_v24 = vsub.s32 %v1525_v23, %v1449_v47  ;;  %v1623_v56 = vld [vmem:[%s2890_s2] sm:$0xff] }
 0x11a   : > { %1089 = vmatmul.mubr.f32.vlgmr.msra.gmra.mrb[0].mxu0 %v972_v27  ;;  %1503 = vbcast.lane.b32.xlu1 %v1501_v51, 256 }
 0x11b   : > { %2462 = vmatpush1.bf16.msra.mxu0 %v2461_v35  ;;  %1175 = vmatprep.mubr.f32.mxu0 %v2607_v46  ;;  %v1450_v59 = vsub.s32 %v1447_v57, %v1449_v47  ;;  %v1624_v57 = vld [vmem:[%s2890_s2 + $0x8] sm:$0xff] }
 0x11c   : > { %2464 = vmatprep.subr.bf16.mxu0 %v2463_v37  ;;  %977 = vmatmul.mubr.f32.vlgmr.msra.gmra.mrb[0].mxu1 %v976_v39 }
 0x11d   : > { %2381 = vmatprep.mubr.msk.f32.mxu1 %vm2611_vm6, %v2607_v46 }
 0x11e   : > { %1510 = vbcast.lane.b32.xlu1 %v1508_v52, 256 }
 0x11f   : > { %2466 = vmatpush1.bf16.msra.mxu0 %v2465_v40 }
 0x120   : > { %2468 = vmatprep.subr.bf16.mxu0 %v2443_v30 }
 0x122   : > { %1178 = vmatmul.mubr.f32.vlgmr.msra.gmra.mrb[0].mxu0 %v973_v29 }
 0x123   : > { %2470 = vmatpush1.bf16.msra.mxu0 %v2445_v32  ;;  %1256 = vmatprep.mubr.f32.mxu0 %v2607_v46 }
 0x124   : > { %2472 = vmatprep.subr.bf16.mxu0 %v2447_v33 }
 0x127   : > { %2474 = vmatpush1.bf16.msra.mxu0 %v2449_v38 }
 0x128   : > { %2476 = vmatprep.subr.bf16.mxu0 %v2475_v41 }
 0x12a   : > { %1260 = vmatmul.mubr.f32.vlgmr.msra.gmra.mrb[0].mxu0 %v974_v34 }
 0x12b   : > { %2478 = vmatpush1.bf16.msra.mxu0 %v2477_v42  ;;  %1354 = vmatprep.mubr.f32.mxu0 %v2607_v46 }
 0x12c   : > { %2480 = vmatprep.subr.bf16.mxu0 %v2479_v43 }
 0x12f   : > { %2482 = vmatpush1.bf16.msra.mxu0 %v2481_v44 }
 0x130   : > { %2484 = vmatprep.subr.bf16.mxu0 %v2443_v30 }
 0x132   : > { %1356 = vmatmul.mubr.f32.vlgmr.msra.gmra.mrb[0].mxu0 %v972_v27 }
 0x133   : > { %2486 = vmatpush1.bf16.msra.mxu0 %v2445_v32  ;;  %1434 = vmatprep.mubr.f32.mxu0 %v2607_v46 }
 0x134   : > { %2488 = vmatprep.subr.bf16.mxu0 %v2447_v33 }
 0x137   : > { %2490 = vmatpush1.bf16.msra.mxu0 %v2449_v38 }
 0x13a   : > { %1436 = vmatmul.mubr.f32.vlgmr.msra.gmra.mrb[0].mxu0 %v972_v27 }
 0x18c   : > { %v1504_v17 = vpop.permute.xlu1 %1503 }
 0x190   : > { %v1511_v20 = vpop.permute.xlu1 %1510 }
 0x1ef   : > { %v978_v53 = vpop.f32.mrb[0].mxu1 }
 0x1f0   : > { %v980_v54 = vpop.f32.mrb[1].mxu1 }
 0x20d   : > { %v1437_v58 = vpop.f32.mrb[0].mxu0 }
 0x20e   : > { %v2812_v60 = vadd.f32 %v1437_v58, %v978_v53  ;;  %v1439_v61 = vpop.f32.mrb[1].mxu0  ;;  %v2610_v58 = vmov 0.0|0.0  }
 0x20f   : > { %v2520_v62 = vadd.f32 %v1439_v61, %v980_v54  ;;  %2491 = vmatprep.subr.bf16.mxu1 %v2610_v58  ;;  %v1634_v61 = vand.u32 4294901760, %v1624_v57 }
 0x211   : > { %v1451_v63 = vrot.slane %v2520_v62, %v1450_v59  ;;  %v1716_v62 = vsub.f32 %v1624_v57, %v1634_v61 }
 0x213   : > { %v1452_v0 = vcombine.high %v1451_v63, %v1451_v63  ;;  %v1459_v1 = vrot.slane %v1451_v63, %v1450_v59 }
 0x215   : > { %v1466_v3 = vrot.slane %v1452_v0, %v1450_v59  ;;  %v1470_v4 = vrot.slane %v1459_v1, %v2803_v48  ;;  %v1631_v59 = vand.u32 4294901760, %v1623_v56  ;;  %v1717_v0 = vand.u32 4294901760, %v1716_v62 }
 0x217   : > { %v1474_v6 = vrot.slane %v1466_v3, %v2803_v48  ;;  %v1477_v7 = vadd.f32 %v1470_v4, %v1442_v2  ;;  %v1718_v2 = vsub.f32 %v1716_v62, %v1717_v0 }
 0x219   : > { %v1478_v8 = vadd.f32 %v1474_v6, %v1443_v5  ;;  %2564 = vtanh.f32 %v1477_v7  ;;  %v1719_v4 = vand.u32 4294901760, %v1718_v2 }
 0x21b   : > { %2566 = vtanh.f32 %v1478_v8  ;;  %v1594_v8 = vld [vmem:[%s2888_s0] sm:$0xff] }
 0x223   : > { %v2565_v10 = vpop.eup %2564 }
 0x224   : > { %v1488_v11 = vmul.f32 %v2565_v10, %v2288_v9 }
 0x225   : > { %v2567_v12 = vpop.eup %2566 }
 0x226   : > { %v1490_v13 = vsel %vm895_vm3, %v1488_v11, 0.0  ;;  %v1489_v14 = vmul.f32 %v2567_v12, %v2288_v9  ;;  %v1595_v11 = vld [vmem:[%s2888_s0 + $0x8] sm:$0xff] }
 0x227   : > { %1491 = vadd.xlane.f32.xlu0 %v1490_v13 }
 0x228   : > { %v1493_v15 = vsel %vm895_vm3, %v1489_v14, 0.0 }
 0x22b   : > { %1494 = vadd.xlane.f32.xlu0 %v1493_v15 }
 0x2b4   : > { %v1492_v18 = vpop.xlane.xlu0 %1491 }
 0x2b5   : > { %v1514_v19 = vadd.f32 %v1504_v17, %v1492_v18 }
 0x2b7   : > { %1519 = vperm.xlu0 %2562, %v1514_v19  }
 0x2b8   : > { %v1495_v21 = vpop.xlane.xlu0 %1494 }
 0x2b9   : > { %v1515_v22 = vadd.f32 %v1511_v20, %v1495_v21 }
 0x2bb   : > { %1522 = vperm.xlu1 %2563, %v1515_v22  }
 0x336   : > { %v1520_v25 = vpop.permute.xlu0 %1519 }
 0x337   : > { %v1529_v27 = vrot.slane %v1520_v25, %v2821_v24 }
 0x33a   : > { %v1523_v26 = vpop.permute.xlu1 %1522 }
 0x33b   : > { %v1533_v28 = vrot.slane %v1523_v26, %v2821_v24 }
 0x33d   : > { %v1535_v29 = vsel %vm1534_vm4, %v1533_v28, %v1529_v27 }
 0x33e   : > { %v1538_v30 = vsel %vm1537_vm5, %v1535_v29, -inf }
 0x33f   : > { %1539 = vmax.xlane.f32.xlu1 %v1538_v30 }
 0x3cc   : > { %v1540_v31 = vpop.xlane.xlu1 %1539 }
 0x3cd   : > { %v1545_v32 = vrot.slane %v1540_v31, %v2803_v48  ;;  %v1549_v33 = vrot.slane %v1540_v31, %v2808_v50 }
 0x3cf   : > { %v1552_v34 = vsub.f32 %v1514_v19, %v1545_v32  ;;  %v1553_v35 = vsub.f32 %v1515_v22, %v1549_v33 }
 0x3d1   : > { %v1554_v36 = vmul.f32 1.442695, %v1552_v34  ;;  %v1556_v37 = vmul.f32 1.442695, %v1553_v35 }
 0x3d3   : > { %2568 = vpow2.f32 %v1554_v36 }
 0x3d4   : > { %2570 = vpow2.f32 %v1556_v37 }
 0x3dd   : > { %v2569_v38 = vpop.eup %2568 }
 0x3de   : > { %v2571_v39 = vpop.eup %2570  ;;  %1561 = vperm.xlu1 %2563, %v2569_v38  }
 0x3df   : > { %1564 = vperm.xlu0 %2562, %v2571_v39  }
 0x45d   : > { %v1562_v40 = vpop.permute.xlu1 %1561 }
 0x45e   : > { %v1565_v41 = vpop.permute.xlu0 %1564  ;;  %v1569_v42 = vrot.slane %v1562_v40, %v2821_v24 }
 0x45f   : > { %v1573_v43 = vrot.slane %v1565_v41, %v2821_v24 }
 0x461   : > { %v1574_v44 = vsel %vm1534_vm4, %v1573_v43, %v1569_v42 }
 0x462   : > { %v1576_v45 = vsel %vm1537_vm5, %v1574_v44, 0.0 }
 0x463   : > { %1577 = vadd.xlane.f32.xlu0 %v1576_v45 }
 0x4f0   : > { %v1578_v47 = vpop.xlane.xlu0 %1577 }
 0x4f1   : > { %v1579_v49 = vmax.f32 %v1578_v47, 1e-30 }
 0x4f3   : > { %2572 = vrcp.f32 %v1579_v49 }
 0x4fd   : > { %v2573_v51 = vpop.eup %2572 }
 0x4fe   : > { %v1585_v52 = vrot.slane %v2573_v51, %v2803_v48  ;;  %v1589_v54 = vrot.slane %v2573_v51, %v2808_v50  ;;  %v2492_v48 = vpack.c.bf16 %v1634_v61, %v1631_v59  ;;  %v1709_v50 = vsub.f32 %v1623_v56, %v1631_v59  ;;  %v886_v61 = vld [vmem:[#allocation3] sm:$0x3] }
 0x500   : > { %v1592_v53 = vmul.f32 %v2569_v38, %v1585_v52  ;;  %v1593_v55 = vmul.f32 %v2571_v39, %v1589_v54  ;;  %2493 = vmatpush3.bf16.msra.mxu1 %v2492_v48  ;;  %v1710_v63 = vand.u32 4294901760, %v1709_v50  ;;  %v2498_v6 = vpack.c.bf16 %v1716_v62, %v1709_v50 }
 0x501   : > { %2494 = vmatprep.subr.bf16.mxu1 %v2610_v58 }
 0x502   : > { %1598 = vperm.xlu1 %2563, %v1592_v53   ;;  %v1711_v1 = vsub.f32 %v1709_v50, %v1710_v63  ;;  %v2504_v7 = vpack.c.bf16 %v1717_v0, %v1710_v63 }
 0x504   : > { %v1712_v3 = vand.u32 4294901760, %v1711_v1 }
 0x506   : > { %1603 = vperm.xlu1 %2563, %v1593_v55   ;;  %v2495_v5 = vpack.c.bf16 %v1719_v4, %v1712_v3 }
 0x581   : > { %v1599_v9 = vpop.permute.xlu1 %1598 }
 0x582   : > { %v1606_v10 = vmul.f32 %v1599_v9, %v1594_v8  ;;  %v2140_v15 = vrot.slane %v1599_v9, %v2821_v24 }
 0x584   : > { %v1609_v12 = vsel %vm1608_vm7, %v1606_v10, 0.0 }
 0x585   : > { %v1610_v13 = vrot.slane %v1609_v12, 4  ;;  %v1604_v14 = vpop.permute.xlu1 %1603 }
 0x586   : > { %v1607_v16 = vmul.f32 %v1604_v14, %v1595_v11  ;;  %v2144_v17 = vrot.slane %v1604_v14, %v2821_v24 }
 0x587   : > { %v1611_v18 = vadd.f32 %v1610_v13, %v1609_v12 }
 0x588   : > { %v1616_v19 = vsel %vm1608_vm7, %v1607_v16, 0.0  ;;  %v2145_v20 = vsel %vm1534_vm4, %v2144_v17, %v2140_v15 }
 0x589   : > { %v1612_v21 = vrot.slane %v1611_v18, 2  ;;  %v1617_v22 = vrot.slane %v1616_v19, 4  ;;  %2147 = vst.msk [vmem:[%s2686_s16] sm:$0x3] %vm1537_vm5, %v2145_v20 }
 0x58b   : > { %v1613_v23 = vadd.f32 %v1612_v21, %v1611_v18  ;;  %v1618_v25 = vadd.f32 %v1617_v22, %v1616_v19 }
 0x58d   : > { %v1619_v26 = vrot.slane %v1618_v25, 2  ;;  %v1614_v27 = vrot.slane %v1613_v23, 1 }
 0x58f   : > { %v1620_v28 = vadd.f32 %v1619_v26, %v1618_v25  ;;  %v1615_v30 = vadd.f32 %v1614_v27, %v1613_v23 }
 0x591   : > { %v1621_v29 = vrot.slane %v1620_v28, 1 }
 0x593   : > { %v1622_v31 = vadd.f32 %v1621_v29, %v1620_v28 }
 0x595   : > { %v1627_v32 = vsel %vm1534_vm4, %v1622_v31, %v1615_v30 }
 0x596   : > { %v1628_v24 = vsel %vm1608_vm7, %v1627_v32, 0 }
 0x597   : > { %v1697_v33 = vand.u32 4294901760, %v1628_v24 }
 0x599   : > { %v1698_v34 = vsub.f32 %v1628_v24, %v1697_v33 }
 0x59b   : > { %v1699_v35 = vand.u32 4294901760, %v1698_v34 }
 0x59d   : > { %v1700_v36 = vsub.f32 %v1698_v34, %v1699_v35 }
 0x59f   : > { %v1701_v37 = vand.u32 4294901760, %v1700_v36 }
 0x5a1   : > { %2382 = vmatmul.mubr.f32.vlgmr.msra.gmra.mrb[2].mxu1 %v1701_v37 }
 0x5a2   : > { %2496 = vmatpush3.bf16.msra.mxu1 %v2495_v5  ;;  %2388 = vmatprep.mubr.msk.f32.mxu1 %vm2611_vm6, %v2607_v46 }
 0x5a3   : > { %2497 = vmatprep.subr.bf16.mxu1 %v2610_v58 }
 0x5a5   : > { %2389 = vmatmul.mubr.f32.vlgmr.msra.gmra.mrb[4].mxu1 %v1697_v33 }
 0x5a6   : > { %2499 = vmatpush3.bf16.msra.mxu1 %v2498_v6  ;;  %2395 = vmatprep.mubr.msk.f32.mxu1 %vm2611_vm6, %v2607_v46 }
 0x5a7   : > { %2500 = vmatprep.subr.bf16.mxu1 %v2610_v58 }
 0x5a9   : > { %2396 = vmatmul.mubr.f32.vlgmr.msra.gmra.mrb[6].mxu1 %v1698_v34 }
 0x5aa   : > { %2502 = vmatpush3.bf16.msra.mxu1 %v2492_v48  ;;  %2402 = vmatprep.mubr.msk.f32.mxu1 %vm2611_vm6, %v2607_v46 }
 0x5ab   : > { %2503 = vmatprep.subr.bf16.mxu1 %v2610_v58 }
 0x5ad   : > { %2403 = vmatmul.mubr.f32.vlgmr.msra.gmra.mrb[8].mxu1 %v1699_v35 }
 0x5ae   : > { %2505 = vmatpush3.bf16.msra.mxu1 %v2504_v7  ;;  %2409 = vmatprep.mubr.msk.f32.mxu1 %vm2611_vm6, %v2607_v46 }
 0x5af   : > { %2506 = vmatprep.subr.bf16.mxu1 %v2610_v58 }
 0x5b1   : > { %2410 = vmatmul.mubr.f32.vlgmr.msra.gmra.mrb[10].mxu1 %v1697_v33 }
 0x5b2   : > { %2508 = vmatpush3.bf16.msra.mxu1 %v2492_v48  ;;  %2416 = vmatprep.mubr.msk.f32.mxu1 %vm2611_vm6, %v2607_v46  ;;  %v2289_v46 = vld [vmem:[%s2892_s4] ss:$0 sm:$0xff] }
 0x5b5   : > { %2417 = vmatmul.mubr.f32.vlgmr.msra.gmra.mrb[12].mxu1 %v1697_v33 }
 0x674   : > { %v1703_v38 = vpop.f32.mrb[2].mxu1 }
 0x675   : > { %v1704_v39 = vadd.f32 %v2812_v60, %v1703_v38  ;;  %v2383_v40 = vpop.f32.mrb[3].mxu1 }
 0x678   : > { %v1784_v41 = vpop.f32.mrb[4].mxu1 }
 0x679   : > { %v1785_v42 = vadd.f32 %v1784_v41, %v1704_v39  ;;  %v2390_v43 = vpop.f32.mrb[5].mxu1 }
 0x67c   : > { %v1860_v44 = vpop.f32.mrb[6].mxu1 }
 0x67d   : > { %v1861_v45 = vadd.f32 %v1860_v44, %v1785_v42  ;;  %v2397_v47 = vpop.f32.mrb[7].mxu1 }
 0x680   : > { %v1935_v49 = vpop.f32.mrb[8].mxu1 }
 0x681   : > { %v1936_v51 = vadd.f32 %v1935_v49, %v1861_v45  ;;  %v2404_v52 = vpop.f32.mrb[9].mxu1 }
 0x684   : > { %v2012_v53 = vpop.f32.mrb[10].mxu1 }
 0x685   : > { %v2013_v54 = vadd.f32 %v2012_v53, %v1936_v51  ;;  %v2411_v55 = vpop.f32.mrb[11].mxu1 }
 0x688   : > { %v2085_v56 = vpop.f32.mrb[12].mxu1 }
 0x689   : > { %v2086_v57 = vadd.f32 %v2085_v56, %v2013_v54  ;;  %v2418_v60 = vpop.f32.mrb[13].mxu1 }
 0x68b   : > { %v2096_v58 = vadd.f32 %v2289_v46, %v2086_v57 }
 0x68d   : > { %2574 = vtanh.f32 %v2096_v58  ;;  %v2290_v48 = vmul.f32 -1.442695, %v2096_v58 }
 0x68f   : > { %2576 = vpow2.f32 %v2290_v48 }
 0x697   : > { %v2575_v59 = vpop.eup %2574 }
 0x698   : > { %2110 = vrot.lane.b32.xlu1 %v2575_v59, %s2612_s20 }
 0x699   : > { %v2577_v50 = vpop.eup %2576 }
 0x69a   : > { %v2100_v62 = vadd.f32 1.0, %v2577_v50 }
 0x69c   : > { %2105 = vrot.lane.b32.xlu1 %v886_v61, %s2612_s20  ;;  %2578 = vrcp.f32 %v2100_v62 }
 0x6a6   : > { %v2579_v63 = vpop.eup %2578 }
 0x70a   : > { %v2111_v0 = vpop.permute.xlu1 %2110 }
 0x70b   : > { %v2113_v1 = vmul.f32 %v2579_v63, %v2111_v0 }
 0x70d   : > { %2115 = vrot.lane.b32.xlu1 %v2113_v1, %s2612_s20 }
 0x70e   : > { %v2106_v2 = vpop.permute.xlu1 %2105 }
 0x70f   : > { %v2108_v3 = vmul.f32 %v2579_v63, %v2106_v2 }
 0x77f   : > { %v2116_v4 = vpop.permute.xlu1 %2115 }
 0x780   : > { %v2118_v5 = vadd.f32 %v2116_v4, %v2108_v3 }
 0x782   : > { %2580 = vtanh.f32 %v2118_v5 }
 0x78c   : > { %v2581_v6 = vpop.eup %2580 }
 0x78d   : > { %2121 = vrot.lane.b32.xlu1 %v2581_v6, %s2612_s20 }
 0x791   : > { %2132 = vrot.lane.b32.xlu1 %v2118_v5, %s2613_s21 }
 0x7ff   : > { %v2122_v7 = vpop.permute.xlu1 %2121 }
 0x800   : > { %v2124_v8 = vmul.f32 %v2579_v63, %v2122_v7 }
 0x802   : > { %2126 = vrot.lane.b32.xlu0 %v2124_v8, %s2614_s22 }
 0x803   : > { %v2133_v9 = vpop.permute.xlu1 %2132 }
 0x804   : > { %2135 = vst.msk [vmem:[#allocation3] sm:$0x3] %vm2129_vm8, %v2133_v9 }
 0x874   : > { %v2127_v10 = vpop.permute.xlu0 %2126 }
 0x875   : > { %2130 = vst.msk [vmem:[#allocation2] sm:$0x3] %vm2129_vm8, %v2127_v10  ;;  %2136 = vst.msk [vmem:[%s2681_s13] sm:$0x3] %vm2129_vm8, %v2127_v10 }
 0x876 PF: > { %s19_s29 = sadd.s32 1, %s2604_s29   ;;  %s2897_s27 = smov %s2600_s28 }
 0x877   : > { %p16_p6 = scmp.ge.s32.totalorder %s19_s29, 10   ;;  %s2898_s28 = smov %s2900_s30 }
 0x879   :  { %18 = sbr.rel (!%p16_p6) target bundleno = 2 (0x2), region = 97 }

</bundles_post_ra>
